<compile_context>
chip_gen: v6e
topology: v6e:2x2x1
jax: 0.10.0
libtpu: 0.0.40
codegen_flags: <defaults>
</compile_context>

<pallas_src>
import jax
import jax.numpy as jnp
from jax.experimental import pallas as pl
from jax.experimental.pallas import tpu as pltpu

_LANES = 128  # TPU lane width; output last dim is padded to a multiple of this.


def _mask_broadcast_kernel(p_ref, out_ref):
    # p_ref  : (L, W)    f32  -- per-layer row = [attn params (H), mlp param (1), zero pad]
    # out_ref: (L, B, W) f32  -- per-layer row replicated across the batch axis
    out_ref[...] = jnp.broadcast_to(p_ref[...][:, None, :], out_ref.shape)


def build_sampled_masks(attn_params, mlp_params, bsz):
    """Materialize the per-layer sampled masks with one lane-dense Pallas call."""
    n_layers, n_heads = attn_params.shape
    assert mlp_params.shape == (n_layers, 1)

    # Consolidate both parameter sets into one lane-dense (L, W) slab, W % 128 == 0.
    width = _LANES * pl.cdiv(n_heads + 1, _LANES)
    combined = jnp.concatenate(
        [attn_params.astype(jnp.float32), mlp_params.astype(jnp.float32)], axis=-1
    )  # (L, H + 1)
    combined = jnp.pad(combined, ((0, 0), (0, width - (n_heads + 1))))  # (L, W)

    bytes_accessed = combined.size * 4 + n_layers * bsz * width * 4
    slab = pl.pallas_call(
        _mask_broadcast_kernel,
        out_shape=jax.ShapeDtypeStruct((n_layers, bsz, width), jnp.float32),
        in_specs=[pl.BlockSpec(memory_space=pltpu.VMEM)],
        out_specs=pl.BlockSpec(memory_space=pltpu.VMEM),
        cost_estimate=pl.CostEstimate(
            flops=0, transcendentals=0, bytes_accessed=bytes_accessed
        ),
    )(combined)

    # Slice the consolidated slab back into the two mask stacks.
    attn_mask = slab[:, :, :n_heads]                 # (L, B, H)
    mlp_mask = slab[:, :, n_heads:n_heads + 1]       # (L, B, 1)
    return attn_mask, mlp_mask


class AttributionPatchingMaskSampler:
    """JAX/Pallas port of the PyTorch module."""

    def __init__(self, n_layers, n_heads, bsz):
        self.use_temperature = False
        self.log_columns = []

        # torch.ones parameter init, kept as stacked (L, ...) arrays.
        attn_params = jnp.ones((n_layers, n_heads), dtype=jnp.float32)
        mlp_params = jnp.ones((n_layers, 1), dtype=jnp.float32)
        self.sampling_params = {"attn": attn_params, "mlp": mlp_params}

        attn_mask, mlp_mask = build_sampled_masks(attn_params, mlp_params, bsz)
        # Stacked (L, bsz, ...) arrays; sampled_mask[k][l] still yields the
        # per-layer (bsz, ...) mask, but without L*2 eager slice dispatches.
        self.sampled_mask = {"attn": attn_mask, "mlp": mlp_mask}

    def forward(self):
        # Faithful to the PyTorch forward: no compute, returns (0, {}).
        return (0, {})

    def __call__(self):
        return self.forward()

    def record_state(self, j):
        pass


if __name__ == "__main__":
    # Small shapes consistent with the module's config.
    n_layers, n_heads, bsz = 4, 8, 2

    # PRNGKey(0)-derived perturbation to exercise the broadcast path with
    # non-trivial values, in addition to the module's torch.ones init.
    key = jax.random.PRNGKey(0)
    attn_params = jnp.ones((n_layers, n_heads), jnp.float32) + \
        0.1 * jax.random.normal(key, (n_layers, n_heads), jnp.float32)
    mlp_params = jnp.ones((n_layers, 1), jnp.float32)

    attn_mask, mlp_mask = build_sampled_masks(attn_params, mlp_params, bsz)
    jax.block_until_ready((attn_mask, mlp_mask))

    # Reference check: ones((bsz, shape)) * param broadcast over the batch axis.
    ref_attn = jnp.broadcast_to(attn_params[:, None, :], (n_layers, bsz, n_heads))
    ref_mlp = jnp.broadcast_to(mlp_params[:, None, :], (n_layers, bsz, 1))
    assert attn_mask.shape == (n_layers, bsz, n_heads)
    assert mlp_mask.shape == (n_layers, bsz, 1)
    assert jnp.allclose(attn_mask, ref_attn)
    assert jnp.allclose(mlp_mask, ref_mlp)

    # Exercise the module itself (torch.ones init) and its forward().
    sampler = AttributionPatchingMaskSampler(n_layers, n_heads, bsz)
    loss, aux = sampler()
    assert loss == 0 and aux == {}
    assert jnp.allclose(sampler.sampled_mask["attn"][0],
                        jnp.ones((bsz, n_heads), jnp.float32))
    assert jnp.allclose(sampler.sampled_mask["mlp"][0],
                        jnp.ones((bsz, 1), jnp.float32))

    print("KERNEL_OK")
</pallas_src>

<mosaic_0001>
module attributes {stable_mosaic.version = 11 : i64} {
  func.func @_mask_broadcast_kernel(%arg0: memref<4x128xf32, #tpu.memory_space<vmem>>, %arg1: memref<4x2x128xf32, #tpu.memory_space<vmem>>) attributes {dimension_semantics = [], scalar_prefetch = 0 : i64, scratch_operands = 0 : i64, tpu.core_type = #tpu.core_type<tc>} {
    %c0 = arith.constant 0 : index
    %c0_0 = arith.constant 0 : index
    %0 = vector.load %arg0[%c0, %c0_0] : memref<4x128xf32, #tpu.memory_space<vmem>>, vector<4x128xf32>
    %1 = vector.shape_cast %0 : vector<4x128xf32> to vector<4x1x128xf32>
    %2 = vector.shape_cast %1 : vector<4x1x128xf32> to vector<4x1x128xf32>
    %3 = vector.broadcast %2 : vector<4x1x128xf32> to vector<4x2x128xf32>
    %c0_1 = arith.constant 0 : index
    %c0_2 = arith.constant 0 : index
    %c0_3 = arith.constant 0 : index
    %4 = vector.load %arg1[%c0_1, %c0_2, %c0_3] : memref<4x2x128xf32, #tpu.memory_space<vmem>>, vector<4x2x128xf32>
    tpu.vector_store %arg1[%c0_1, %c0_2, %c0_3], %3 {strides = array<i32>} : memref<4x2x128xf32, #tpu.memory_space<vmem>>, vector<4x2x128xf32>,
    return
  }
}

</mosaic_0001>

<bundles_post_ra>
// kernel: tpu_custom_call.1
= control target key start
LH: loop header
LB: loop body
LE: loop exit
PB: predicated region body
PF: predicated region fallthrough
CT: control target
= control target key end

     0   :  { %6 = vsyncpa [#allocation3], 0  ;;  %s159_s0 = inlined_call_operand.hbm [shape: f32[4,128], index: 0, kind: input, shape index: {}]   ;;  %s160_s1 = inlined_call_operand.hbm [shape: f32[4,2,128], index: 1, kind: output, shape index: {}]  }
   0x1   :  { %7 = vsyncpa [#allocation4], 0  ;;  %s138_s6 = smov [#allocation2]  }
   0x2   :  { %s14_s7 = sshll.u32 %s138_s6, 4  ;;  %s15_s7 = int_to_ptr.vmem [resolvable:$true] %s14_s7 }
   0x3   :  { %s102_s8 = scalar_lea.vmem %s15_s7, 64  ;;  %p107_p1 = scmp.lt.s32.totalorder %s15_s7, %s15_s7 }
   0x4   :  { %p103_p0 = scmp.ne.s32.totalorder %s15_s7, %s102_s8  ;;  %p108_p2 = scmp.lt.s32.totalorder %s102_s8, %s102_s8 }
   0x6   :  { %p109_p3 = por %p108_p2, %p107_p1 }
   0x8   :  { %p110_p4 = pnand %p109_p3, %p103_p0 }
   0xa   :  { %113 = shalt.err (!%p110_p4)
}
   0xb   :  { %17 = dma.hbm_to_vmem [thread:$0]  %s159_s0, 64, %s15_s7, [#allocation3]  }
   0xc   :  { %134 = dma.done.wait [#allocation3], 64  }
   0xd   :  { %135 = vsyncadd [#allocation3], 4294967232  ;;  %v34_v0 = vlaneseq  ;;  %v139_v1 = vmov 1966171168   ;;  %s140_s11 = smov [#allocation5]  }
   0xe   :  { %v32_v2 = vunpack.c.l.s4 %v139_v1  ;;  %v88_v7 = vld.sshfl [vmem:[#allocation2] sm:$0x33 pattern:$0x75316420]  ;;  %s76_s12 = sshll.u32 %s140_s11, 4  ;;  %s77_s12 = int_to_ptr.vmem [resolvable:$true] %s76_s12 }
   0xf   :  { %v35_v3 = vshrl.u32 %v34_v0, 7  ;;  %v30_v9 = vcombine.high %v88_v7, %v88_v7  ;;  %s114_s0 = scalar_lea.vmem %s77_s12, 128  ;;  %p119_p6 = scmp.lt.s32.totalorder %s77_s12, %s77_s12 }
  0x10   :  { %v33_v4 = vunpack.c.0.s8 %v32_v2  ;;  %p115_p5 = scmp.ne.s32.totalorder %s77_s12, %s114_s0  ;;  %p120_p7 = scmp.lt.s32.totalorder %s114_s0, %s114_s0 }
  0x11   :  { %v49_v6 = vsub.s32 0, %v35_v3 }
  0x12   :  { %v36_v5 = vsub.s32 %v33_v4, %v35_v3  ;;  %p121_p8 = por %p120_p7, %p119_p6 }
  0x14   :  { %v37_v8 = vrot.slane %v88_v7, %v36_v5  ;;  %v44_v11 = vrot.slane %v30_v9, %v36_v5  ;;  %p122_p9 = pnand %p121_p8, %p115_p5 }
  0x16   :  { %v50_v10 = vrot.slane %v37_v8, %v49_v6  ;;  %v45_v12 = vcombine.high %v37_v8, %v37_v8  ;;  %v54_v13 = vrot.slane %v44_v11, %v49_v6  ;;  %v46_v15 = vcombine.high %v44_v11, %v44_v11 }
  0x18   :  { %67 = vst [vmem:[#allocation5] sm:$0x3] %v50_v10  ;;  %v58_v14 = vrot.slane %v45_v12, %v49_v6  ;;  %68 = vst [vmem:[#allocation5 + $0x2] sm:$0x3] %v54_v13  ;;  %v62_v16 = vrot.slane %v46_v15, %v49_v6 }
  0x1a   :  { %69 = vst [vmem:[#allocation5 + $0x4] sm:$0x3] %v58_v14  ;;  %70 = vst [vmem:[#allocation5 + $0x6] sm:$0x3] %v62_v16 }
  0x1b   :  { %125 = shalt.err (!%p122_p9)
}
  0x1c   :  { %s141_s13 = smov 32   ;;  %s142_s14 = smov 2  }
  0x1d   :  { %82 = dma.vmem_to_hbm [thread:$0]  %s77_s12, 128, %s160_s1, [#allocation4], %s141_s13, %s141_s13, %s142_s14  }
  0x1e   :  { %136 = dma.done.wait [#allocation4], 128  }
  0x1f   :  { %137 = vsyncadd [#allocation4], 4294967168 }
  0x20   :  { %86 = vsyncpa [#allocation3], 1 }
  0x21   :  { %87 = vsyncpa [#allocation4], 1 }

</bundles_post_ra>
